<compile_context>
chip_gen: v5e
topology: v5e:2x2
jax: 0.10.0
libtpu: 0.0.40
codegen_flags: <defaults>
</compile_context>

<pallas_src>
import numpy as np
import jax
import jax.numpy as jnp
from jax.experimental import pallas as pl
from jax.experimental.pallas import tpu as pltpu


def sparse_token_kernel(x_ref, wl9_ref, wc_ref, const_ref, o_ref):
    # x_ref    : (Bt, P, C)  f32  raw per-batch activations (no im2col, no pad)
    # wl9_ref  : (9N, P)     f32  shifted W_lin stack, rows ordered k*N + n  (resident)
    # wc_ref   : (9, C, D)   f32  conv weight per 3x3 tap                    (resident)
    # const_ref: (N, D)      f32  folded parameter-only term                 (resident)
    # o_ref    : (Bt, N, D)  f32
    bt, n, _ = o_ref.shape
    wl9 = wl9_ref[...]
    wc = wc_ref[...]
    const = const_ref[...]
    for b in range(bt):  # static unroll over the batch block
        # One fat MXU pass over the heavy contraction dim P (lane-dense K = P).
        t = jnp.dot(wl9, x_ref[b], preferred_element_type=jnp.float32)   # (9N, C)
        out = const
        for k in range(9):  # 9 tiny (N, C) @ (C, D) tap matmuls, f32 accumulation
            out = out + jnp.dot(t[k * n:(k + 1) * n, :], wc[k],
                                preferred_element_type=jnp.float32)
        o_ref[b] = out.astype(o_ref.dtype)


def _pick_batch_block(B):
    # Group batches per grid step to amortize fixed per-step overhead, but keep
    # >= 2 grid steps when possible so the x DMA still software-pipelines.
    for bt in (8, 4, 2):
        if B % bt == 0 and B // bt >= 2:
            return bt
    return 1


@jax.jit
def sparse_token_forward(x_nhwc, w_conv_t, b_conv, pe, w_lin, b_lin):
    """x_nhwc: (B, H, W, C); w_conv_t: torch-layout conv weight (D, C, 3, 3);
    b_conv: (D,); pe: (P, D); w_lin: (N, P) torch Linear weight; b_lin: (N,)."""
    B, H, W, C = x_nhwc.shape
    D = w_conv_t.shape[0]
    N = w_lin.shape[0]
    P = H * W

    # ---- parameter-only constants (built once per trace; all tiny) ----------
    # (1) 9 spatially-shifted, zero-bordered copies of W_lin, one per 3x3 tap.
    #     W_lin_s[k][n, h'*W+w'] = W_lin[n, (h'-dh)*W + (w'-dw)]  (zero outside),
    #     dh = kh-1, dw = kw-1.  Rows stacked as r = k*N + n.
    w_lin_2d = w_lin.reshape(N, H, W)
    w_pad = jnp.pad(w_lin_2d, ((0, 0), (1, 1), (1, 1)))
    taps = [w_pad[:, 2 - kh:2 - kh + H, 2 - kw:2 - kw + W].reshape(N, P)
            for kh in range(3) for kw in range(3)]
    wl9 = jnp.stack(taps, axis=0).reshape(9 * N, P).astype(jnp.float32)

    # (2) conv weight per tap: (D, C, 3, 3) -> (3, 3, C, D) -> (9, C, D).
    wc = jnp.transpose(w_conv_t, (2, 3, 1, 0)).reshape(9, C, D).astype(jnp.float32)

    # (3) parameter-only additive term, full f32 precision for the pe matmul.
    const_nd = (jnp.dot(w_lin, pe, precision=jax.lax.Precision.HIGHEST,
                        preferred_element_type=jnp.float32)
                + jnp.sum(w_lin, axis=1, keepdims=True) * b_conv[None, :]
                + b_lin[:, None]).astype(jnp.float32)

    # ---- the only per-batch streamed operand: raw x, un-padded ---------------
    x_flat = x_nhwc.reshape(B, P, C)

    bt = _pick_batch_block(B)

    out = pl.pallas_call(
        sparse_token_kernel,
        out_shape=jax.ShapeDtypeStruct((B, N, D), jnp.float32),
        grid_spec=pltpu.PrefetchScalarGridSpec(
            num_scalar_prefetch=0,
            grid=(B // bt,),
            in_specs=[
                pl.BlockSpec((bt, P, C), lambda i: (i, 0, 0)),   # streamed per step
                pl.BlockSpec((9 * N, P), lambda i: (0, 0)),      # grid-invariant
                pl.BlockSpec((9, C, D), lambda i: (0, 0, 0)),    # grid-invariant
                pl.BlockSpec((N, D), lambda i: (0, 0)),          # grid-invariant
            ],
            out_specs=pl.BlockSpec((bt, N, D), lambda i: (i, 0, 0)),
        ),
        compiler_params=pltpu.CompilerParams(
            dimension_semantics=("parallel",)),
    )(x_flat, wl9, wc, const_nd)
    return out


def positional_encoding(max_len, embed_dim):
    # Identical to SparseToken.positional_encoding (numpy, then cast to f32).
    angle_rads = np.arange(max_len)[:, None] / np.power(
        10000, 2 * (np.arange(embed_dim)[None, :] // 2) / np.float32(embed_dim))
    angle_rads[:, 0::2] = np.sin(angle_rads[:, 0::2])
    angle_rads[:, 1::2] = np.cos(angle_rads[:, 1::2])
    return jnp.asarray(angle_rads, dtype=jnp.float32)                # (P, D)


def reference_forward(x_nhwc, w_conv_t, b_conv, pe, w_lin, b_lin):
    # Pure-JAX reference mirroring the PyTorch forward exactly.
    x = jnp.transpose(x_nhwc, (0, 3, 1, 2))                          # B, C, H, W
    y = jax.lax.conv_general_dilated(
        x, w_conv_t, window_strides=(1, 1), padding="SAME",
        dimension_numbers=("NCHW", "OIHW", "NCHW"),
        precision=jax.lax.Precision.HIGHEST) + b_conv[None, :, None, None]
    B, D, H, W = y.shape
    s = jnp.transpose(y.reshape(B, D, H * W), (0, 2, 1)) + pe[None]  # B, P, D
    s = jnp.transpose(s, (0, 2, 1))                                  # B, D, P
    o = jnp.einsum('bdp,np->bdn', s, w_lin,
                   precision=jax.lax.Precision.HIGHEST) + b_lin[None, None, :]
    return jnp.transpose(o, (0, 2, 1))                               # B, N, D


if __name__ == "__main__":
    B, H, W, C = 2, 16, 16, 4       # batch, hw_size, hw_size, in_channels
    N, D = 8, 32                    # ltoken_num, ltoken_dim
    P = H * W

    key = jax.random.PRNGKey(0)
    kx, kw1, kb1, kw2, kb2 = jax.random.split(key, 5)

    x = jax.random.normal(kx, (B, H, W, C), dtype=jnp.float32)

    # Deterministic parameter init (PyTorch-style uniform fan-in bounds).
    kconv = 1.0 / np.sqrt(C * 3 * 3)
    w_conv = jax.random.uniform(kw1, (D, C, 3, 3), jnp.float32, -kconv, kconv)
    b_conv = jax.random.uniform(kb1, (D,), jnp.float32, -kconv, kconv)
    klin = 1.0 / np.sqrt(P)
    w_lin = jax.random.uniform(kw2, (N, P), jnp.float32, -klin, klin)
    b_lin = jax.random.uniform(kb2, (N,), jnp.float32, -klin, klin)

    pe = positional_encoding(P, D)

    out = sparse_token_forward(x, w_conv, b_conv, pe, w_lin, b_lin)
    out = jax.block_until_ready(out)

    ref = reference_forward(x, w_conv, b_conv, pe, w_lin, b_lin)
    assert out.shape == (B, N, D)
    np.testing.assert_allclose(np.asarray(out), np.asarray(ref), atol=3e-2, rtol=3e-2)
    print("KERNEL_OK")
</pallas_src>

<mosaic_0001>
module attributes {stable_mosaic.version = 11 : i64} {
  func.func @sparse_token_kernel(%arg0: i32, %arg1: memref<1x256x4xf32, #tpu.memory_space<vmem>>, %arg2: memref<72x256xf32, #tpu.memory_space<vmem>>, %arg3: memref<9x4x32xf32, #tpu.memory_space<vmem>>, %arg4: memref<8x32xf32, #tpu.memory_space<vmem>>, %arg5: memref<1x8x32xf32, #tpu.memory_space<vmem>>) attributes {dimension_semantics = [#tpu.dimension_semantics<parallel>], iteration_bounds = array<i64: 2>, scalar_prefetch = 0 : i64, scratch_operands = 0 : i64, tpu.core_type = #tpu.core_type<tc>, window_params = [{transform_indices = @transform_0, window_bounds = array<i64: 1, 256, 4>}, {pipeline_mode = #tpu.pipeline_mode<synchronous>, transform_indices = @transform_1, window_bounds = array<i64: 72, 256>}, {pipeline_mode = #tpu.pipeline_mode<synchronous>, transform_indices = @transform_2, window_bounds = array<i64: 9, 4, 32>}, {pipeline_mode = #tpu.pipeline_mode<synchronous>, transform_indices = @transform_3, window_bounds = array<i64: 8, 32>}, {transform_indices = @transform_4, window_bounds = array<i64: 1, 8, 32>}]} {
    %c0 = arith.constant 0 : index
    %c0_0 = arith.constant 0 : index
    %0 = vector.load %arg2[%c0, %c0_0] : memref<72x256xf32, #tpu.memory_space<vmem>>, vector<72x256xf32>
    %c0_1 = arith.constant 0 : index
    %c0_2 = arith.constant 0 : index
    %c0_3 = arith.constant 0 : index
    %1 = vector.load %arg3[%c0_1, %c0_2, %c0_3] : memref<9x4x32xf32, #tpu.memory_space<vmem>>, vector<9x4x32xf32>
    %c0_4 = arith.constant 0 : index
    %c0_5 = arith.constant 0 : index
    %2 = vector.load %arg4[%c0_4, %c0_5] : memref<8x32xf32, #tpu.memory_space<vmem>>, vector<8x32xf32>
    %c0_6 = arith.constant 0 : index
    %c0_7 = arith.constant 0 : index
    %c0_8 = arith.constant 0 : index
    %3 = vector.load %arg1[%c0_6, %c0_7, %c0_8] : memref<1x256x4xf32, #tpu.memory_space<vmem>>, vector<1x256x4xf32>
    %4 = vector.shape_cast %3 : vector<1x256x4xf32> to vector<256x4xf32>
    %cst = arith.constant dense<0.000000e+00> : vector<72x4xf32>
    %5 = tpu.matmul %0, %4, %cst {dimension_numbers = #tpu.dot_dimension_numbers<[1], [0], [0], [1], [0, 0, 1, 1], [], []>} : vector<72x256xf32>, vector<256x4xf32>, vector<72x4xf32> -> vector<72x4xf32>
    %6 = vector.extract_strided_slice %5 {offsets = [0, 0], sizes = [8, 4], strides = [1, 1]} : vector<72x4xf32> to vector<8x4xf32>
    %7 = vector.extract_strided_slice %1 {offsets = [0, 0, 0], sizes = [1, 4, 32], strides = [1, 1, 1]} : vector<9x4x32xf32> to vector<1x4x32xf32>
    %8 = vector.shape_cast %7 : vector<1x4x32xf32> to vector<4x32xf32>
    %cst_9 = arith.constant dense<0.000000e+00> : vector<8x32xf32>
    %9 = tpu.matmul %6, %8, %cst_9 {dimension_numbers = #tpu.dot_dimension_numbers<[1], [0], [0], [1], [0, 0, 1, 1], [], []>} : vector<8x4xf32>, vector<4x32xf32>, vector<8x32xf32> -> vector<8x32xf32>
    %10 = arith.addf %2, %9 : vector<8x32xf32>
    %11 = vector.extract_strided_slice %5 {offsets = [8, 0], sizes = [8, 4], strides = [1, 1]} : vector<72x4xf32> to vector<8x4xf32>
    %12 = vector.extract_strided_slice %1 {offsets = [1, 0, 0], sizes = [1, 4, 32], strides = [1, 1, 1]} : vector<9x4x32xf32> to vector<1x4x32xf32>
    %13 = vector.shape_cast %12 : vector<1x4x32xf32> to vector<4x32xf32>
    %cst_10 = arith.constant dense<0.000000e+00> : vector<8x32xf32>
    %14 = tpu.matmul %11, %13, %cst_10 {dimension_numbers = #tpu.dot_dimension_numbers<[1], [0], [0], [1], [0, 0, 1, 1], [], []>} : vector<8x4xf32>, vector<4x32xf32>, vector<8x32xf32> -> vector<8x32xf32>
    %15 = arith.addf %10, %14 : vector<8x32xf32>
    %16 = vector.extract_strided_slice %5 {offsets = [16, 0], sizes = [8, 4], strides = [1, 1]} : vector<72x4xf32> to vector<8x4xf32>
    %17 = vector.extract_strided_slice %1 {offsets = [2, 0, 0], sizes = [1, 4, 32], strides = [1, 1, 1]} : vector<9x4x32xf32> to vector<1x4x32xf32>
    %18 = vector.shape_cast %17 : vector<1x4x32xf32> to vector<4x32xf32>
    %cst_11 = arith.constant dense<0.000000e+00> : vector<8x32xf32>
    %19 = tpu.matmul %16, %18, %cst_11 {dimension_numbers = #tpu.dot_dimension_numbers<[1], [0], [0], [1], [0, 0, 1, 1], [], []>} : vector<8x4xf32>, vector<4x32xf32>, vector<8x32xf32> -> vector<8x32xf32>
    %20 = arith.addf %15, %19 : vector<8x32xf32>
    %21 = vector.extract_strided_slice %5 {offsets = [24, 0], sizes = [8, 4], strides = [1, 1]} : vector<72x4xf32> to vector<8x4xf32>
    %22 = vector.extract_strided_slice %1 {offsets = [3, 0, 0], sizes = [1, 4, 32], strides = [1, 1, 1]} : vector<9x4x32xf32> to vector<1x4x32xf32>
    %23 = vector.shape_cast %22 : vector<1x4x32xf32> to vector<4x32xf32>
    %cst_12 = arith.constant dense<0.000000e+00> : vector<8x32xf32>
    %24 = tpu.matmul %21, %23, %cst_12 {dimension_numbers = #tpu.dot_dimension_numbers<[1], [0], [0], [1], [0, 0, 1, 1], [], []>} : vector<8x4xf32>, vector<4x32xf32>, vector<8x32xf32> -> vector<8x32xf32>
    %25 = arith.addf %20, %24 : vector<8x32xf32>
    %26 = vector.extract_strided_slice %5 {offsets = [32, 0], sizes = [8, 4], strides = [1, 1]} : vector<72x4xf32> to vector<8x4xf32>
    %27 = vector.extract_strided_slice %1 {offsets = [4, 0, 0], sizes = [1, 4, 32], strides = [1, 1, 1]} : vector<9x4x32xf32> to vector<1x4x32xf32>
    %28 = vector.shape_cast %27 : vector<1x4x32xf32> to vector<4x32xf32>
    %cst_13 = arith.constant dense<0.000000e+00> : vector<8x32xf32>
    %29 = tpu.matmul %26, %28, %cst_13 {dimension_numbers = #tpu.dot_dimension_numbers<[1], [0], [0], [1], [0, 0, 1, 1], [], []>} : vector<8x4xf32>, vector<4x32xf32>, vector<8x32xf32> -> vector<8x32xf32>
    %30 = arith.addf %25, %29 : vector<8x32xf32>
    %31 = vector.extract_strided_slice %5 {offsets = [40, 0], sizes = [8, 4], strides = [1, 1]} : vector<72x4xf32> to vector<8x4xf32>
    %32 = vector.extract_strided_slice %1 {offsets = [5, 0, 0], sizes = [1, 4, 32], strides = [1, 1, 1]} : vector<9x4x32xf32> to vector<1x4x32xf32>
    %33 = vector.shape_cast %32 : vector<1x4x32xf32> to vector<4x32xf32>
    %cst_14 = arith.constant dense<0.000000e+00> : vector<8x32xf32>
    %34 = tpu.matmul %31, %33, %cst_14 {dimension_numbers = #tpu.dot_dimension_numbers<[1], [0], [0], [1], [0, 0, 1, 1], [], []>} : vector<8x4xf32>, vector<4x32xf32>, vector<8x32xf32> -> vector<8x32xf32>
    %35 = arith.addf %30, %34 : vector<8x32xf32>
    %36 = vector.extract_strided_slice %5 {offsets = [48, 0], sizes = [8, 4], strides = [1, 1]} : vector<72x4xf32> to vector<8x4xf32>
    %37 = vector.extract_strided_slice %1 {offsets = [6, 0, 0], sizes = [1, 4, 32], strides = [1, 1, 1]} : vector<9x4x32xf32> to vector<1x4x32xf32>
    %38 = vector.shape_cast %37 : vector<1x4x32xf32> to vector<4x32xf32>
    %cst_15 = arith.constant dense<0.000000e+00> : vector<8x32xf32>
    %39 = tpu.matmul %36, %38, %cst_15 {dimension_numbers = #tpu.dot_dimension_numbers<[1], [0], [0], [1], [0, 0, 1, 1], [], []>} : vector<8x4xf32>, vector<4x32xf32>, vector<8x32xf32> -> vector<8x32xf32>
    %40 = arith.addf %35, %39 : vector<8x32xf32>
    %41 = vector.extract_strided_slice %5 {offsets = [56, 0], sizes = [8, 4], strides = [1, 1]} : vector<72x4xf32> to vector<8x4xf32>
    %42 = vector.extract_strided_slice %1 {offsets = [7, 0, 0], sizes = [1, 4, 32], strides = [1, 1, 1]} : vector<9x4x32xf32> to vector<1x4x32xf32>
    %43 = vector.shape_cast %42 : vector<1x4x32xf32> to vector<4x32xf32>
    %cst_16 = arith.constant dense<0.000000e+00> : vector<8x32xf32>
    %44 = tpu.matmul %41, %43, %cst_16 {dimension_numbers = #tpu.dot_dimension_numbers<[1], [0], [0], [1], [0, 0, 1, 1], [], []>} : vector<8x4xf32>, vector<4x32xf32>, vector<8x32xf32> -> vector<8x32xf32>
    %45 = arith.addf %40, %44 : vector<8x32xf32>
    %46 = vector.extract_strided_slice %5 {offsets = [64, 0], sizes = [8, 4], strides = [1, 1]} : vector<72x4xf32> to vector<8x4xf32>
    %47 = vector.extract_strided_slice %1 {offsets = [8, 0, 0], sizes = [1, 4, 32], strides = [1, 1, 1]} : vector<9x4x32xf32> to vector<1x4x32xf32>
    %48 = vector.shape_cast %47 : vector<1x4x32xf32> to vector<4x32xf32>
    %cst_17 = arith.constant dense<0.000000e+00> : vector<8x32xf32>
    %49 = tpu.matmul %46, %48, %cst_17 {dimension_numbers = #tpu.dot_dimension_numbers<[1], [0], [0], [1], [0, 0, 1, 1], [], []>} : vector<8x4xf32>, vector<4x32xf32>, vector<8x32xf32> -> vector<8x32xf32>
    %50 = arith.addf %45, %49 : vector<8x32xf32>
    %c0_18 = arith.constant 0 : index
    %c0_19 = arith.constant 0 : index
    %c0_20 = arith.constant 0 : index
    %51 = vector.load %arg5[%c0_18, %c0_19, %c0_20] : memref<1x8x32xf32, #tpu.memory_space<vmem>>, vector<1x8x32xf32>
    %52 = vector.shape_cast %51 : vector<1x8x32xf32> to vector<8x32xf32>
    %53 = vector.shape_cast %50 : vector<8x32xf32> to vector<1x8x32xf32>
    tpu.vector_store %arg5[%c0_18, %c0_19, %c0_20], %53 {strides = array<i32>} : memref<1x8x32xf32, #tpu.memory_space<vmem>>, vector<1x8x32xf32>,
    return
  }
  func.func @transform_0(%arg0: i32) -> (i32, i32, i32) {
    %c0_i32 = arith.constant 0 : i32
    %c0_i32_0 = arith.constant 0 : i32
    %c0_i32_1 = arith.constant 0 : i32
    return %arg0, %c0_i32, %c0_i32_0 : i32, i32, i32
  }
  func.func @transform_1(%arg0: i32) -> (i32, i32) {
    %c0_i32 = arith.constant 0 : i32
    %c0_i32_0 = arith.constant 0 : i32
    %c0_i32_1 = arith.constant 0 : i32
    return %c0_i32, %c0_i32_0 : i32, i32
  }
  func.func @transform_2(%arg0: i32) -> (i32, i32, i32) {
    %c0_i32 = arith.constant 0 : i32
    %c0_i32_0 = arith.constant 0 : i32
    %c0_i32_1 = arith.constant 0 : i32
    %c0_i32_2 = arith.constant 0 : i32
    return %c0_i32, %c0_i32_0, %c0_i32_1 : i32, i32, i32
  }
  func.func @transform_3(%arg0: i32) -> (i32, i32) {
    %c0_i32 = arith.constant 0 : i32
    %c0_i32_0 = arith.constant 0 : i32
    %c0_i32_1 = arith.constant 0 : i32
    return %c0_i32, %c0_i32_0 : i32, i32
  }
  func.func @transform_4(%arg0: i32) -> (i32, i32, i32) {
    %c0_i32 = arith.constant 0 : i32
    %c0_i32_0 = arith.constant 0 : i32
    %c0_i32_1 = arith.constant 0 : i32
    return %arg0, %c0_i32, %c0_i32_0 : i32, i32, i32
  }
}

</mosaic_0001>

<bundles_post_ra>
// kernel: sparse_token_forward.1
= control target key start
LH: loop header
LB: loop body
LE: loop exit
PB: predicated region body
PF: predicated region fallthrough
CT: control target
= control target key end

     0   :  { %9 = vsyncpa [#allocation3], 0  ;;  %s1077_s0 = inlined_call_operand.vmem [shape: f32[2,256,4], index: 0, kind: input, shape index: {}]   ;;  %s1078_s1 = inlined_call_operand.vmem [shape: f32[72,256], index: 1, kind: input, shape index: {}]   ;;  %s1079_s2 = inlined_call_operand.vmem [shape: f32[9,4,32], index: 2, kind: input, shape index: {}]   ;;  %s1080_s3 = inlined_call_operand.vmem [shape: f32[8,32], index: 3, kind: input, shape index: {}]   ;;  %s1081_s4 = inlined_call_operand.hbm [shape: f32[2,8,32], index: 4, kind: output, shape index: {}]  }
   0x1   :  { %11 = vsyncpa [#allocation3 + $0x1], 0  ;;  %s856_s15 = smov 0   ;;  %s858_s16 = smov 0  }
   0x2   :  { %s860_s17 = smov 0   ;;  %s862_s18 = smov 0  }
   0x3 LB: > { %s877_s19 = sadd.s32 4294967295, %s829_s18   ;;  %s666_s20 = sadd.s32 4294967294, %s829_s18   ;;  %s829_s18 = sphi %s862_s18, %s1087_s18   ;;  %s825_s17 = sphi %s860_s17, %s1086_s17   ;;  %s821_s16 = sphi %s858_s16, %s1085_s16   ;;  %s817_s15 = sphi %s856_s15, %s1084_s15  }
   0x4   : > { %s881_s21 = sadd.s32 1, %s829_s18   ;;  %s113_s22 = sadd.s32 1, %s825_s17 }
   0x5   : > { %s110_s23 = ssub.s32 %s829_s18, %s881_s21  ;;  %p123_p0 = scmp.ne.s32.totalorder %s825_s17, %s821_s16 }
   0x6   : > { %p111_p1 = scmp.eq.s32.totalorder %s110_s23, 0  ;;  %p124_p2 = scmp.eq.s32.totalorder %s877_s19, 1 }
   0x7   : > { %p129_p3 = scmp.ne.s32.totalorder %s821_s16, %s817_s15  ;;  %p130_p4 = scmp.eq.s32.totalorder %s666_s20, 1 }
   0x8   : > { %s892_s24 = scalar_select %p111_p1, %s825_s17, %s113_s22  }
   0x9   : > { %p894_p5 = por %p124_p2, %p123_p0  ;;  %p898_p6 = por %p130_p4, %p129_p3 }
   0xa   : > { %p669_p7 = scmp.ge.s32.totalorder %s829_s18, 1  ;;  %p165_p8 = scmp.lt.s32.totalorder %s829_s18, 3 }
   0xc   : > { %p166_p9 = pnand %p669_p7, %p165_p8 }
   0xd   : > { %p191_p10 = scmp.lt.s32.totalorder (!%p166_p9), %s877_s19, 1  ;;  %s188_s11 = sand.u32 (!%p166_p9), 1, %s821_s16  }
   0xe   : > { %169 = sbr.rel (%p166_p9) target bundleno = 377 (0x179), region = 36  ;;  %s670_s12 = sshll.u32 (!%p166_p9), %s188_s11, 3 }
   0xf   : > { %s692_s13 = sshll.u32 (!%p166_p9), %s877_s19, 3  ;;  %s190_s23 = scalar_lea.vmem (!%p166_p9), [#allocation2], %s670_s12 }
  0x10   : > { %s602_s22 = scalar_lea.hbm (!%p166_p9), %s1081_s4, %s692_s13  ;;  %s592_s29 = scalar_lea.sflag (!%p166_p9), [#allocation3], %s188_s11 }
  0x11   : > { %s787_s7 = scalar_lea.hbm (!%p166_p9), %s1081_s4, 16 }
  0x13   : > { %s192_s27 = scalar_select %p191_p10, %s877_s19, 1  ;;  %v196_v32 = vld [vmem:[%s1078_s1] sm:$0xff]  ;;  %v197_v33 = vld [vmem:[%s1078_s1 + $0x8] sm:$0xff]  ;;  %v198_v35 = vld [vmem:[%s1078_s1 + $0x10] sm:$0xff]  ;;  %vm348_vm0 = vcmask 1043456   ;;  %vm344_vm1 = vcmask 31744  }
  0x14   : > { %v208_v34 = vld [vmem:[%s1078_s1 + $0x60] sm:$0xff]  ;;  %v199_v36 = vld [vmem:[%s1078_s1 + $0x18] sm:$0xff]  ;;  %v210_v37 = vld [vmem:[%s1078_s1 + $0x70] sm:$0xff]  ;;  %vm589_vm2 = vcmask 261120  }
  0x15   : > { %s695_s28 = sshll.u32 %s192_s27, 8  ;;  %v211_v38 = vld [vmem:[%s1078_s1 + $0x78] sm:$0xff]  ;;  %v200_v39 = vld [vmem:[%s1078_s1 + $0x20] sm:$0xff]  ;;  %v201_v40 = vld [vmem:[%s1078_s1 + $0x28] sm:$0xff]  ;;  %s604_s27 = sshll.u32 %s190_s23, 4  ;;  %s605_s27 = int_to_ptr.vmem [resolvable:$true] %s604_s27 }
  0x16   : > { %s909_s5 = scalar_lea.vmem %s1077_s0, %s695_s28  ;;  %v212_v41 = vld [vmem:[%s1078_s1 + $0x80] sm:$0xff]  ;;  %v213_v42 = vld [vmem:[%s1078_s1 + $0x88] sm:$0xff]  ;;  %v202_v43 = vld [vmem:[%s1078_s1 + $0x30] sm:$0xff]  ;;  %s606_s28 = sshll.u32 %s602_s22, 4  ;;  %s607_s28 = int_to_ptr.hbm [resolvable:$true] %s606_s28 }
  0x17   : > { %v239_v0 = vld [vmem:[%s909_s5 + $0x78] sm:$0xff]  ;;  %v238_v2 = vld [vmem:[%s909_s5 + $0x70] sm:$0xff]  ;;  %v237_v4 = vld [vmem:[%s909_s5 + $0x68] sm:$0xff]  ;;  %s781_s19 = sshra.s32 %s607_s28, 4  ;;  %s782_s19 = int_to_ptr.hbm [resolvable:$true] %s781_s19 }
  0x18   : > { %v255_v1 = vld [vmem:[%s909_s5 + $0xf8] sm:$0xff]  ;;  %256 = vmatpush.msra.mxu0 %v239_v0  ;;  %v254_v3 = vld [vmem:[%s909_s5 + $0xf0] sm:$0xff]  ;;  %v253_v5 = vld [vmem:[%s909_s5 + $0xe8] sm:$0xff]  ;;  %696 = vmatpush.msra.mxu3 %v239_v0  ;;  %s783_s30 = scalar_lea.hbm %s782_s19, 8  ;;  %p788_p0 = scmp.lt.s32.totalorder %s782_s19, %s1081_s4 }
  0x19   : > { %300 = vmatpush.msra.mxu1 %v255_v1  ;;  %712 = vmatpush.msra.mxu2 %v255_v1  ;;  %v236_v6 = vld [vmem:[%s909_s5 + $0x60] sm:$0xff]  ;;  %v235_v8 = vld [vmem:[%s909_s5 + $0x58] sm:$0xff]  ;;  %v234_v10 = vld [vmem:[%s909_s5 + $0x50] sm:$0xff]  ;;  %p784_p11 = scmp.ne.s32.totalorder %s782_s19, %s783_s30  ;;  %p789_p1 = scmp.lt.s32.totalorder %s787_s7, %s783_s30 }
  0x1a   : > { %257 = vmatpush.msra.mxu0 %v238_v2  ;;  %v252_v7 = vld [vmem:[%s909_s5 + $0xe0] sm:$0xff]  ;;  %697 = vmatpush.msra.mxu3 %v238_v2  ;;  %v251_v9 = vld [vmem:[%s909_s5 + $0xd8] sm:$0xff]  ;;  %v250_v11 = vld [vmem:[%s909_s5 + $0xd0] sm:$0xff] }
  0x1b   : > { %301 = vmatpush.msra.mxu1 %v254_v3  ;;  %713 = vmatpush.msra.mxu2 %v254_v3  ;;  %v233_v12 = vld [vmem:[%s909_s5 + $0x48] sm:$0xff]  ;;  %v232_v14 = vld [vmem:[%s909_s5 + $0x40] sm:$0xff]  ;;  %v231_v16 = vld [vmem:[%s909_s5 + $0x38] sm:$0xff]  ;;  %p785_p12 = pnand %p784_p11, %p894_p5  ;;  %p790_p2 = por %p789_p1, %p788_p0 }
  0x1c   : > { %258 = vmatpush.msra.mxu0 %v237_v4  ;;  %698 = vmatpush.msra.mxu3 %v237_v4  ;;  %v249_v13 = vld [vmem:[%s909_s5 + $0xc8] sm:$0xff]  ;;  %v248_v15 = vld [vmem:[%s909_s5 + $0xc0] sm:$0xff]  ;;  %v247_v17 = vld [vmem:[%s909_s5 + $0xb8] sm:$0xff] }
  0x1d   : > { %302 = vmatpush.msra.mxu1 %v253_v5  ;;  %714 = vmatpush.msra.mxu2 %v253_v5  ;;  %v230_v18 = vld [vmem:[%s909_s5 + $0x30] sm:$0xff]  ;;  %v229_v20 = vld [vmem:[%s909_s5 + $0x28] sm:$0xff]  ;;  %v228_v22 = vld [vmem:[%s909_s5 + $0x20] sm:$0xff]  ;;  %p786_p13 = pneg %p785_p12 }
  0x1e   : > { %259 = vmatpush.msra.mxu0 %v236_v6  ;;  %699 = vmatpush.msra.mxu3 %v236_v6  ;;  %v246_v19 = vld [vmem:[%s909_s5 + $0xb0] sm:$0xff]  ;;  %v245_v21 = vld [vmem:[%s909_s5 + $0xa8] sm:$0xff]  ;;  %v244_v23 = vld [vmem:[%s909_s5 + $0xa0] sm:$0xff] }
  0x1f   : > { %303 = vmatpush.msra.mxu1 %v252_v7  ;;  %715 = vmatpush.msra.mxu2 %v252_v7  ;;  %v227_v24 = vld [vmem:[%s909_s5 + $0x18] sm:$0xff]  ;;  %v226_v26 = vld [vmem:[%s909_s5 + $0x10] sm:$0xff]  ;;  %v225_v28 = vld [vmem:[%s909_s5 + $0x8] sm:$0xff]  ;;  %p791_p3 = pnand %p790_p2, %p786_p13 }
  0x20   : > { %260 = vmatpush.msra.mxu0 %v235_v8  ;;  %700 = vmatpush.msra.mxu3 %v235_v8  ;;  %v243_v25 = vld [vmem:[%s909_s5 + $0x98] sm:$0xff]  ;;  %v242_v27 = vld [vmem:[%s909_s5 + $0x90] sm:$0xff]  ;;  %v241_v29 = vld [vmem:[%s909_s5 + $0x88] sm:$0xff] }
  0x21   : > { %304 = vmatpush.msra.mxu1 %v251_v9  ;;  %716 = vmatpush.msra.mxu2 %v251_v9  ;;  %v224_v30 = vld [vmem:[%s909_s5] sm:$0xff]  ;;  %v203_v44 = vld [vmem:[%s1078_s1 + $0x38] sm:$0xff]  ;;  %v205_v46 = vld [vmem:[%s1078_s1 + $0x48] sm:$0xff] }
  0x22   : > { %261 = vmatpush.msra.mxu0 %v234_v10  ;;  %701 = vmatpush.msra.mxu3 %v234_v10  ;;  %v240_v31 = vld [vmem:[%s909_s5 + $0x80] sm:$0xff]  ;;  %v206_v47 = vld [vmem:[%s1078_s1 + $0x50] sm:$0xff]  ;;  %v207_v48 = vld [vmem:[%s1078_s1 + $0x58] sm:$0xff] }
  0x23   : > { %305 = vmatpush.msra.mxu1 %v250_v11  ;;  %717 = vmatpush.msra.mxu2 %v250_v11  ;;  %v204_v45 = vld [vmem:[%s1078_s1 + $0x40] sm:$0xff]  ;;  %v209_v49 = vld [vmem:[%s1078_s1 + $0x68] sm:$0xff]  ;;  %v218_v57 = vld [vmem:[%s1079_s2 + $0x10] sm:$0xf] }
  0x24   : > { %262 = vmatpush.msra.mxu0 %v233_v12  ;;  %702 = vmatpush.msra.mxu3 %v233_v12  ;;  %v214_v50 = vld [vmem:[%s1079_s2] sm:$0xf]  ;;  %v215_v51 = vld [vmem:[%s1079_s2 + $0x4] sm:$0xf]  ;;  %v216_v52 = vld [vmem:[%s1079_s2 + $0x8] sm:$0xf] }
  0x25   : > { %306 = vmatpush.msra.mxu1 %v249_v13  ;;  %718 = vmatpush.msra.mxu2 %v249_v13  ;;  %v217_v53 = vld [vmem:[%s1079_s2 + $0xc] sm:$0xf]  ;;  %v219_v61 = vld [vmem:[%s1079_s2 + $0x14] sm:$0xf]  ;;  %v220_v1 = vld [vmem:[%s1079_s2 + $0x18] sm:$0xf] }
  0x26   : > { %263 = vmatpush.msra.mxu0 %v232_v14  ;;  %703 = vmatpush.msra.mxu3 %v232_v14  ;;  %v221_v5 = vld [vmem:[%s1079_s2 + $0x1c] sm:$0xf]  ;;  %v222_v10 = vld [vmem:[%s1079_s2 + $0x20] sm:$0xf] }
  0x27   : > { %307 = vmatpush.msra.mxu1 %v248_v15  ;;  %719 = vmatpush.msra.mxu2 %v248_v15 }
  0x28   : > { %264 = vmatpush.msra.mxu0 %v231_v16  ;;  %704 = vmatpush.msra.mxu3 %v231_v16 }
  0x29   : > { %308 = vmatpush.msra.mxu1 %v247_v17  ;;  %720 = vmatpush.msra.mxu2 %v247_v17 }
  0x2a   : > { %265 = vmatpush.msra.mxu0 %v230_v18  ;;  %705 = vmatpush.msra.mxu3 %v230_v18 }
  0x2b   : > { %309 = vmatpush.msra.mxu1 %v246_v19  ;;  %721 = vmatpush.msra.mxu2 %v246_v19 }
  0x2c   : > { %266 = vmatpush.msra.mxu0 %v229_v20  ;;  %706 = vmatpush.msra.mxu3 %v229_v20 }
  0x2d   : > { %310 = vmatpush.msra.mxu1 %v245_v21  ;;  %722 = vmatpush.msra.mxu2 %v245_v21 }
  0x2e   : > { %267 = vmatpush.msra.mxu0 %v228_v22  ;;  %707 = vmatpush.msra.mxu3 %v228_v22 }
  0x2f   : > { %311 = vmatpush.msra.mxu1 %v244_v23  ;;  %723 = vmatpush.msra.mxu2 %v244_v23 }
  0x30   : > { %268 = vmatpush.msra.mxu0 %v227_v24  ;;  %708 = vmatpush.msra.mxu3 %v227_v24 }
  0x31   : > { %312 = vmatpush.msra.mxu1 %v243_v25  ;;  %724 = vmatpush.msra.mxu2 %v243_v25  ;;  %v223_v25 = vld [vmem:[%s1080_s3] sm:$0xff] }
  0x32   : > { %269 = vmatpush.msra.mxu0 %v226_v26  ;;  %709 = vmatpush.msra.mxu3 %v226_v26 }
  0x33   : > { %313 = vmatpush.msra.mxu1 %v242_v27  ;;  %725 = vmatpush.msra.mxu2 %v242_v27 }
  0x34   : > { %270 = vmatpush.msra.mxu0 %v225_v28  ;;  %710 = vmatpush.msra.mxu3 %v225_v28 }
  0x35   : > { %314 = vmatpush.msra.mxu1 %v241_v29  ;;  %726 = vmatpush.msra.mxu2 %v241_v29 }
  0x36   : > { %271 = vmatpush.msra.mxu0 %v224_v30  ;;  %711 = vmatpush.msra.mxu3 %v224_v30 }
  0x37   : > { %315 = vmatpush.msra.mxu1 %v240_v31  ;;  %272 = vmatmul.f32.vlgmr.msra.gmra.mxu0 %v196_v32 }
  0x38   : > { %316 = vmatmul.f32.vlgmr.msra.gmra.mxu1 %v197_v33  ;;  %727 = vmatpush.msra.mxu2 %v240_v31 }
  0x39   : > { %290 = vmatmul.f32.vlgmr.msra.gmra.mxu3 %v208_v34  ;;  %337 = vmatmul.f32.vlgmr.msra.gmra.mxu2 %v211_v38 }
  0x3a   : > { %673 = vmatpush.msk.msrb.mxu2 %vm348_vm0, %v214_v50  ;;  %675 = vmatpush.msk.msrb.mxu3 %vm348_vm0, %v215_v51 }
  0x3c   : > { %677 = vmatpush.msk.msra.mxu2 %vm348_vm0, %v216_v52  ;;  %679 = vmatpush.msk.msra.mxu3 %vm348_vm0, %v217_v53 }
  0x3f   : > { %275 = vmatmul.f32.gmra.mxu0 %v198_v35 }
  0x40   : > { %319 = vmatmul.f32.gmra.mxu1 %v199_v36 }
  0x41   : > { %293 = vmatmul.f32.gmra.mxu3 %v210_v37  ;;  %340 = vmatmul.f32.gmra.mxu2 %v213_v42 }
  0x47   : > { %278 = vmatmul.f32.gmra.mxu0 %v200_v39 }
  0x48   : > { %322 = vmatmul.f32.gmra.mxu1 %v201_v40 }
  0x49   : > { %296 = vmatmul.f32.gmra.mxu3 %v212_v41 }
  0x4f   : > { %281 = vmatmul.f32.gmra.mxu0 %v202_v43 }
  0x50   : > { %325 = vmatmul.f32.gmra.mxu1 %v203_v44 }
  0x57   : > { %284 = vmatmul.f32.gmra.mxu0 %v204_v45 }
  0x58   : > { %328 = vmatmul.f32.gmra.mxu1 %v205_v46 }
  0x5f   : > { %287 = vmatmul.f32.gmra.mxu0 %v206_v47 }
  0x60   : > { %331 = vmatmul.f32.gmra.mxu1 %v207_v48 }
  0x68   : > { %334 = vmatmul.f32.gmra.mxu1 %v209_v49 }
  0xb4   : > { %v273_v54 = vpop.f32.mrf.mxu0 }
  0xb5   : > { %v317_v55 = vpop.f32.mrf.mxu1 }
  0xb6   : > { %v318_v56 = vadd.f32 %v317_v55, %v273_v54 }
  0xb8   : > { %674 = vmatmul.msk.f32.vlgmr.msrb.gmra.mxu2 %vm344_vm1, %v318_v56 }
  0xb9   : > { %681 = vmatpush.msk.msrb.mxu2 %vm348_vm0, %v218_v57 }
  0xbc   : > { %v276_v58 = vpop.f32.mrf.mxu0  ;;  %v291_v6 = vpop.f32.mrf.mxu3 }
  0xbd   : > { %v320_v59 = vpop.f32.mrf.mxu1  ;;  %v338_v15 = vpop.f32.mrf.mxu2 }
  0xbe   : > { %v321_v60 = vadd.f32 %v320_v59, %v276_v58 }
  0xc0   : > { %676 = vmatmul.msk.f32.vlgmr.msrb.gmra.mxu3 %vm344_vm1, %v321_v60 }
  0xc1   : > { %683 = vmatpush.msk.msrb.mxu3 %vm348_vm0, %v219_v61 }
  0xc4   : > { %v279_v62 = vpop.f32.mrf.mxu0  ;;  %v294_v14 = vpop.f32.mrf.mxu3 }
  0xc5   : > { %v323_v63 = vpop.f32.mrf.mxu1  ;;  %v339_v16 = vadd.f32 %v338_v15, %v294_v14  ;;  %v341_v20 = vpop.f32.mrf.mxu2 }
  0xc6   : > { %v324_v0 = vadd.f32 %v323_v63, %v279_v62 }
  0xc8   : > { %678 = vmatmul.msk.f32.vlgmr.msra.gmra.mxu2 %vm344_vm1, %v324_v0 }
  0xc9   : > { %685 = vmatpush.msk.msra.mxu2 %vm348_vm0, %v220_v1 }
  0xcc   : > { %v282_v2 = vpop.f32.mrf.mxu0  ;;  %v297_v19 = vpop.f32.mrf.mxu3 }
  0xcd   : > { %v326_v3 = vpop.f32.mrf.mxu1  ;;  %v342_v21 = vadd.f32 %v341_v20, %v297_v19 }
  0xce   : > { %v327_v4 = vadd.f32 %v326_v3, %v282_v2 }
  0xd0   : > { %680 = vmatmul.msk.f32.vlgmr.msra.gmra.mxu3 %vm344_vm1, %v327_v4 }
  0xd1   : > { %687 = vmatpush.msk.msra.mxu3 %vm348_vm0, %v221_v5 }
  0xd4   : > { %v285_v7 = vpop.f32.mrf.mxu0 }
  0xd5   : > { %v329_v8 = vpop.f32.mrf.mxu1 }
  0xd6   : > { %v330_v9 = vadd.f32 %v329_v8, %v285_v7 }
  0xd8   : > { %682 = vmatmul.msk.f32.vlgmr.msrb.gmra.mxu2 %vm344_vm1, %v330_v9 }
  0xd9   : > { %689 = vmatpush.msk.msrb.mxu2 %vm348_vm0, %v222_v10 }
  0xdc   : > { %v288_v11 = vpop.f32.mrf.mxu0 }
  0xdd   : > { %v332_v12 = vpop.f32.mrf.mxu1 }
  0xde   : > { %v333_v13 = vadd.f32 %v332_v12, %v288_v11 }
  0xe0   : > { %684 = vmatmul.msk.f32.vlgmr.msrb.gmra.mxu3 %vm344_vm1, %v333_v13 }
  0xe5   : > { %v335_v17 = vpop.f32.mrf.mxu1 }
  0xe6   : > { %v336_v18 = vadd.f32 %v335_v17, %v291_v6 }
  0xe8   : > { %686 = vmatmul.msk.f32.vlgmr.msra.gmra.mxu2 %vm344_vm1, %v336_v18  ;;  %688 = vmatmul.msk.f32.vlgmr.msra.gmra.mxu3 %vm344_vm1, %v339_v16 }
  0xf0   : > { %690 = vmatmul.msk.f32.vlgmr.msrb.gmra.mxu2 %vm344_vm1, %v342_v21 }
 0x13b   : > { %v369_v22 = vpop.f32.mrf.mxu2 }
 0x13c   : > { %v372_v27 = vadd.f32 %v369_v22, %v223_v25 }
 0x143   : > { %v396_v23 = vpop.f32.mrf.mxu3 }
 0x144   : > { %v399_v29 = vadd.f32 %v396_v23, %v372_v27 }
 0x14b   : > { %v423_v24 = vpop.f32.mrf.mxu2 }
 0x14c   : > { %v426_v30 = vadd.f32 %v423_v24, %v399_v29 }
 0x153   : > { %v450_v26 = vpop.f32.mrf.mxu3 }
 0x154   : > { %v453_v32 = vadd.f32 %v450_v26, %v426_v30 }
 0x15b   : > { %v477_v28 = vpop.f32.mrf.mxu2 }
 0x15c   : > { %v480_v33 = vadd.f32 %v477_v28, %v453_v32 }
 0x163   : > { %v504_v31 = vpop.f32.mrf.mxu3 }
 0x164   : > { %v507_v35 = vadd.f32 %v504_v31, %v480_v33 }
 0x16b   : > { %v531_v34 = vpop.f32.mrf.mxu2  ;;  %v558_v37 = vpop.f32.mrf.mxu3 }
 0x16c   : > { %v534_v36 = vadd.f32 %v531_v34, %v507_v35 }
 0x16e   : > { %v561_v38 = vadd.f32 %v558_v37, %v534_v36 }
 0x173   : > { %v585_v39 = vpop.f32.mrf.mxu2 }
 0x174   : > { %v588_v40 = vadd.f32 %v585_v39, %v561_v38 }
 0x176   : > { %590 = vst.msk [vmem:[%s190_s23] sm:$0xff] %vm589_vm2, %v588_v40 }
 0x177   : > { %794 = shalt.err (!%p791_p3)
}
 0x178   : > { %728 = dma.vmem_to_hbm [thread:$0]  (%p894_p5), %s605_s27, 128, %s607_s28, %s592_s29  }
 0x179 PF: > { %p734_p4 = scmp.ge.s32.totalorder %s829_s18, 2  ;;  %s618_s10 = sand.u32 1, %s817_s15  }
 0x17a   : > { %s619_s11 = scalar_lea.sflag [#allocation3], %s618_s10 }
 0x17b   : > { %p731_p7 = pnand %p734_p4, %p898_p6 }
 0x17d   : > { %p732_p8 = pneg %p731_p7 }
 0x17f   : > { %812 = dma.done.wait (%p732_p8), %s619_s11, 128  }
 0x180   : > { %814 = vsyncadd (%p732_p8), %s619_s11, 4294967168  ;;  %p14_p9 = scmp.ge.s32.totalorder %s881_s21, 4   ;;  %s1084_s15 = smov %s821_s16 }
 0x181   : > { %s1085_s16 = smov %s825_s17  ;;  %s1086_s17 = smov %s892_s24 }
 0x182   : > { %s1087_s18 = smov %s881_s21  ;;  %16 = sbr.rel (!%p14_p9) target bundleno = 3 (0x3), region = 71 }
 0x187   :  { %625 = vsyncpa [#allocation3], 1 }
 0x188   :  { %627 = vsyncpa [#allocation3 + $0x1], 1 }

</bundles_post_ra>
